<compile_context>
chip_gen: v7x
topology: tpu7x:2x2x1
jax: 0.10.0
libtpu: 0.0.40
codegen_flags: <defaults>
</compile_context>

<pallas_src>
import functools

import jax
import jax.numpy as jnp
from jax.experimental import pallas as pl
from jax.experimental.pallas import tpu as pltpu


# ---------------------------------------------------------------------------
# Hardware query (fallback-safe)
# ---------------------------------------------------------------------------
def _device_info():
    is_v5e = False
    vmem_total = 128 * 1024 * 1024
    try:
        kind = jax.devices()[0].device_kind.lower()
        is_v5e = ("v5 lite" in kind) or ("v5e" in kind) or ("v5litepod" in kind)
    except Exception:
        pass
    try:
        vmem_total = int(pltpu.get_tpu_info().vmem_capacity_bytes)
    except Exception:
        pass
    return is_v5e, vmem_total


# ---------------------------------------------------------------------------
# Pallas kernel: per-pixel CE + ignore_label mask + weight (+ masked reduce)
# ---------------------------------------------------------------------------
def _base_loss_kernel(*refs, ignore_label, has_weight, produce_elem,
                      compute_dtype, loss_scale, hw, tile_hw,
                      tiles_per_chunk, needs_tail_mask):
    pred_ref = refs[0]                     # (C, T)   native pred dtype
    tgt_ref = refs[1]                      # (1, T)   int32
    w_ref = refs[2] if has_weight else None
    out_ref = refs[-1]                     # (1, T) elem  or  (2, T) running sums

    logits = pred_ref[...]
    if logits.dtype != compute_dtype:
        logits = logits.astype(compute_dtype)                        # in-register
    tgt = tgt_ref[...]                                               # (1, T) int32
    num_classes, tile = logits.shape

    # ---- concrete elementwise loss: per-pixel softmax cross-entropy ----
    # TODO(synk): BaseLoss.forward is abstract; subclasses supply the
    # elementwise loss.  Softmax CE is used as a representative instance.
    m = jnp.max(logits, axis=0, keepdims=True)                       # (1, T)
    e = jnp.exp(logits - m)                                          # (C, T) compute dtype
    # TODO(synk): if the bundle dump on v7x shows VALU as the saturating slot,
    # offload this sum-over-C to the MXU via a ones(1,C) matmul.
    sum_e = jnp.sum(e, axis=0, keepdims=True, dtype=jnp.float32)     # (1, T) f32
    lse = jnp.log(sum_e) + m.astype(jnp.float32)                     # (1, T) f32

    class_ids = jax.lax.broadcasted_iota(jnp.int32, (num_classes, tile), 0)
    tgt_c = jnp.clip(tgt, 0, num_classes - 1)                        # match reference
    picked = jnp.sum(jnp.where(class_ids == tgt_c, logits, jnp.zeros_like(logits)),
                     axis=0, keepdims=True, dtype=jnp.float32)       # (1, T) f32
    ce = lse - picked                                                # (1, T) f32

    # ---- BaseLoss machinery: optional per-pixel weight + ignore mask ----
    if has_weight:
        ce = ce * w_ref[...].astype(jnp.float32)
    valid = tgt != ignore_label                                      # (1, T) bool
    if needs_tail_mask:
        if produce_elem:
            pix0 = pl.program_id(1) * tile_hw
        else:
            pix0 = (pl.program_id(1) * tiles_per_chunk + pl.program_id(2)) * tile_hw
        lane = jax.lax.broadcasted_iota(jnp.int32, valid.shape, 1)
        valid = jnp.logical_and(valid, (pix0 + lane) < hw)
    loss = jnp.where(valid, ce, 0.0)                                 # (1, T) f32

    if produce_elem:
        if loss_scale != 1.0:                                        # fold loss_weight in
            loss = loss * jnp.float32(loss_scale)
        out_ref[...] = loss
    else:
        # Output block index is constant along the tile axis -> VMEM-resident
        # accumulator; init on the first tile of each (batch, chunk).
        @pl.when(pl.program_id(2) == 0)
        def _():
            out_ref[...] = jnp.zeros_like(out_ref)
        # Fused single (2, T) accumulate: row 0 = loss, row 1 = valid count.
        out_ref[...] += jnp.concatenate([loss, valid.astype(jnp.float32)], axis=0)


# ---------------------------------------------------------------------------
# Tile selection: byte-based, honest VMEM accounting
# ---------------------------------------------------------------------------
def _pick_tile_hw(hw, c, pred_itemsize, compute_itemsize, vmem_budget,
                  max_tile_cap=32768):
    """Largest lane-dense pixel tile fitting the VMEM budget.

    Per-pixel VMEM bytes: double-buffered pred DMA block (2*c*pred_itemsize)
    + in-kernel (C,T) compute temps (logits-in-compute-dtype + exp,
    ~2*c*compute_itemsize) + narrow side streams (~48 B).
    """
    if hw < 128:
        return hw                                     # full-dim block
    bytes_per_pixel = 2 * c * pred_itemsize + 2 * c * compute_itemsize + 48
    max_tile = max(128, min(max_tile_cap,
                            (vmem_budget // bytes_per_pixel) // 128 * 128))
    if hw % 128 == 0:
        if hw <= max_tile:
            return hw                                 # one tile per batch element
        t = max_tile
        while t >= 128:                               # largest divisor <= max_tile
            if hw % t == 0:
                break
            t -= 128
        if t * 2 >= max_tile:                         # good divisor: no tail mask
            return t
    return min(max_tile, (hw // 128) * 128)           # cdiv grid + in-kernel tail mask


# ---------------------------------------------------------------------------
# Wrapper: pallas_call plumbing
# ---------------------------------------------------------------------------
def _run_base_loss(pred, target, weight, ignore_label, produce_elem,
                   loss_weight=1.0):
    n, c, h, w = pred.shape
    hw = h * w
    pred3 = pred.reshape(n, c, hw)                    # free reshape of native NCHW
    tgt = target if target.dtype == jnp.int32 else target.astype(jnp.int32)
    tgt3 = tgt.reshape(n, 1, hw)

    is_v5e, vmem_total = _device_info()
    if vmem_total <= 64 * 1024 * 1024:                # v7x-class: 64 MiB per TC
        vmem_limit = 40 * 1024 * 1024
        budget = 20 * 1024 * 1024
    else:                                             # v5e / v6e: 128 MiB
        vmem_limit = 64 * 1024 * 1024
        budget = 40 * 1024 * 1024

    # bf16 VPU/EUP exist on v6e/v7x; v5e upcasts to f32.
    compute_dtype = (jnp.bfloat16
                     if (pred.dtype == jnp.bfloat16 and not is_v5e)
                     else jnp.float32)

    tile_hw = _pick_tile_hw(hw, c,
                            jnp.dtype(pred.dtype).itemsize,
                            jnp.dtype(compute_dtype).itemsize,
                            budget)
    n_tiles = pl.cdiv(hw, tile_hw)
    needs_tail_mask = (n_tiles * tile_hw != hw)

    has_weight = weight is not None
    inputs = [pred3, tgt3]
    if has_weight:
        inputs.append(weight.reshape(n, 1, hw))       # native dtype, upcast in kernel

    if produce_elem:
        grid = (n, n_tiles)
        tiles_per_chunk = n_tiles
        in_specs = [
            pl.BlockSpec((None, c, tile_hw), lambda i, j: (i, 0, j)),
            pl.BlockSpec((None, 1, tile_hw), lambda i, j: (i, 0, j)),
        ]
        if has_weight:
            in_specs.append(pl.BlockSpec((None, 1, tile_hw), lambda i, j: (i, 0, j)))
        out_shape = jax.ShapeDtypeStruct((n, 1, hw), jnp.float32)
        out_specs = pl.BlockSpec((None, 1, tile_hw), lambda i, j: (i, 0, j))
        dim_sem = ("parallel", "parallel")            # no carried state
    else:
        # Split the pixel tiles into 2 'parallel' chunks so a second
        # TensorCore (v7x) has work even when N == 1; no-op cost on 1-TC chips.
        n_chunks = 2 if (n_tiles % 2 == 0 and n_tiles >= 2) else 1
        tiles_per_chunk = n_tiles // n_chunks
        grid = (n, n_chunks, tiles_per_chunk)

        def in_map(i, ch, j, _tpc=tiles_per_chunk):
            return (i, 0, ch * _tpc + j)

        in_specs = [
            pl.BlockSpec((None, c, tile_hw), in_map),
            pl.BlockSpec((None, 1, tile_hw), in_map),
        ]
        if has_weight:
            in_specs.append(pl.BlockSpec((None, 1, tile_hw), in_map))
        out_shape = jax.ShapeDtypeStruct((n, n_chunks, 2, tile_hw), jnp.float32)
        out_specs = pl.BlockSpec((None, None, 2, tile_hw),
                                 lambda i, ch, j: (i, ch, 0, 0))
        dim_sem = ("parallel", "parallel", "arbitrary")   # j is the reduction axis

    # TODO(synk): on v5e, if profiling shows the pred DMA exposed at large C,
    # add pipeline_mode=pl.Buffered(3) on the pred BlockSpec (sweep 2 vs 3).
    kernel = functools.partial(
        _base_loss_kernel,
        ignore_label=ignore_label,
        has_weight=has_weight,
        produce_elem=produce_elem,
        compute_dtype=compute_dtype,
        loss_scale=float(loss_weight),
        hw=hw,
        tile_hw=tile_hw,
        tiles_per_chunk=tiles_per_chunk,
        needs_tail_mask=needs_tail_mask,
    )
    return pl.pallas_call(
        kernel,
        out_shape=out_shape,
        grid_spec=pltpu.PrefetchScalarGridSpec(
            num_scalar_prefetch=0,
            grid=grid,
            in_specs=in_specs,
            out_specs=out_specs,
        ),
        compiler_params=pltpu.CompilerParams(
            dimension_semantics=dim_sem,
            vmem_limit_bytes=vmem_limit,
        ),
    )(*inputs)


# ---------------------------------------------------------------------------
# BaseLoss module equivalent
# ---------------------------------------------------------------------------
class BaseLossPallas:
    def __init__(self, loss_name, ignore_label=-100, reduction="mean",
                 loss_weight=1.0, **kwargs):
        self.reduction = reduction
        self.loss_weight = loss_weight
        self._loss_name = loss_name
        self.ignore_label = ignore_label

    @property
    def loss_name(self):
        return self._loss_name

    def forward(self, pred, target, weight=None, avg_factor=None,
                reduction_override=None, ignore_label=None, **kwargs):
        # pred: (N, C, H, W) float;  target: (N, H, W) int;  weight: (N, H, W) or None
        reduction = reduction_override if reduction_override is not None else self.reduction
        ignore = self.ignore_label if ignore_label is None else ignore_label
        n, c, h, w = pred.shape

        if reduction == "none":
            # loss_weight is folded into the kernel store (no extra HBM pass).
            elem = _run_base_loss(pred, target, weight, ignore,
                                  produce_elem=True, loss_weight=self.loss_weight)
            return elem.reshape(n, h, w)

        sums = _run_base_loss(pred, target, weight, ignore, produce_elem=False)
        loss_sum = jnp.sum(sums[:, :, 0, :])
        if reduction == "sum":
            return loss_sum * self.loss_weight
        # 'mean': average over valid (non-ignored) pixels unless avg_factor given
        if avg_factor is None:
            denom = jnp.maximum(jnp.sum(sums[:, :, 1, :]), 1.0)
        else:
            denom = jnp.asarray(avg_factor, jnp.float32)
        return loss_sum / denom * self.loss_weight

    __call__ = forward


# ---------------------------------------------------------------------------
# Pure-JAX reference for verification
# ---------------------------------------------------------------------------
def _reference(pred, target, weight, reduction, loss_weight, ignore_label,
               avg_factor=None):
    N, C, H, W = pred.shape
    logp = jax.nn.log_softmax(pred.astype(jnp.float32), axis=1)          # NCHW
    onehot = jax.nn.one_hot(jnp.clip(target, 0, C - 1), C, axis=1)       # NCHW
    ce = -jnp.sum(logp * onehot, axis=1)                                 # NHW
    valid = target != ignore_label
    w = jnp.ones_like(ce) if weight is None else weight.astype(jnp.float32)
    lw = jnp.where(valid, ce * w, 0.0)
    if reduction == "none":
        return lw * loss_weight
    s = jnp.sum(lw)
    if reduction == "sum":
        return s * loss_weight
    denom = (jnp.maximum(jnp.sum(valid.astype(jnp.float32)), 1.0)
             if avg_factor is None else avg_factor)
    return s / denom * loss_weight


if __name__ == "__main__":
    key = jax.random.PRNGKey(0)
    k1, k2, k3 = jax.random.split(key, 3)

    N, C, H, W = 2, 4, 16, 16
    pred = jax.random.normal(k1, (N, C, H, W), jnp.float32)
    target = jax.random.randint(k2, (N, H, W), 0, C).astype(jnp.int32)
    target = target.at[0, 0, :4].set(-100)       # sprinkle some ignored pixels
    weight = jax.random.uniform(k3, (N, H, W), jnp.float32, 0.5, 1.5)

    loss_mod = BaseLossPallas("loss_ce", ignore_label=-100, reduction="mean",
                              loss_weight=1.0)

    out_mean = loss_mod(pred, target)
    jax.block_until_ready(out_mean)
    ref_mean = _reference(pred, target, None, "mean", 1.0, -100)
    assert jnp.allclose(out_mean, ref_mean, rtol=1e-5, atol=1e-5), (out_mean, ref_mean)

    out_sum = loss_mod(pred, target, reduction_override="sum")
    jax.block_until_ready(out_sum)
    ref_sum = _reference(pred, target, None, "sum", 1.0, -100)
    assert jnp.allclose(out_sum, ref_sum, rtol=1e-5, atol=1e-5), (out_sum, ref_sum)

    out_none = loss_mod(pred, target, reduction_override="none")
    jax.block_until_ready(out_none)
    ref_none = _reference(pred, target, None, "none", 1.0, -100)
    assert jnp.allclose(out_none, ref_none, rtol=1e-5, atol=1e-5)

    out_wmean = loss_mod(pred, target, weight=weight)
    jax.block_until_ready(out_wmean)
    ref_wmean = _reference(pred, target, weight, "mean", 1.0, -100)
    assert jnp.allclose(out_wmean, ref_wmean, rtol=1e-5, atol=1e-5), (out_wmean, ref_wmean)

    # loss_weight folded into the kernel on the 'none' path
    loss_mod_w = BaseLossPallas("loss_ce", ignore_label=-100, reduction="none",
                                loss_weight=0.5)
    out_none_w = loss_mod_w(pred, target, weight=weight)
    jax.block_until_ready(out_none_w)
    ref_none_w = _reference(pred, target, weight, "none", 0.5, -100)
    assert jnp.allclose(out_none_w, ref_none_w, rtol=1e-5, atol=1e-5)

    # odd spatial size (H*W not a multiple of 128) -> cdiv grid + tail mask
    Ho, Wo = 12, 12
    predo = jax.random.normal(k1, (1, C, Ho, Wo), jnp.float32)
    targeto = jax.random.randint(k2, (1, Ho, Wo), 0, C).astype(jnp.int32)
    targeto = targeto.at[0, 0, :3].set(-100)
    out_o = loss_mod(predo, targeto)
    jax.block_until_ready(out_o)
    ref_o = _reference(predo, targeto, None, "mean", 1.0, -100)
    assert jnp.allclose(out_o, ref_o, rtol=1e-5, atol=1e-5), (out_o, ref_o)
    out_o_none = loss_mod(predo, targeto, reduction_override="none")
    jax.block_until_ready(out_o_none)
    ref_o_none = _reference(predo, targeto, None, "none", 1.0, -100)
    assert jnp.allclose(out_o_none, ref_o_none, rtol=1e-5, atol=1e-5)

    # bf16 pred -> bf16 in-kernel compute on v6e/v7x (f32 on v5e)
    pred_bf = pred.astype(jnp.bfloat16)
    out_bf = loss_mod(pred_bf, target)
    jax.block_until_ready(out_bf)
    ref_bf = _reference(pred_bf.astype(jnp.float32), target, None, "mean", 1.0, -100)
    assert jnp.allclose(out_bf, ref_bf, rtol=5e-2, atol=5e-2), (out_bf, ref_bf)

    print("KERNEL_OK")
</pallas_src>

<mosaic_0001>
module attributes {stable_mosaic.version = 11 : i64} {
  func.func @_base_loss_kernel(%arg0: i32, %arg1: i32, %arg2: i32, %arg3: memref<1x4x256xf32, #tpu.memory_space<vmem>>, %arg4: memref<1x1x256xi32, #tpu.memory_space<vmem>>, %arg5: memref<1x1x2x256xf32, #tpu.memory_space<vmem>>) attributes {dimension_semantics = [#tpu.dimension_semantics<parallel>, #tpu.dimension_semantics<parallel>, #tpu.dimension_semantics<arbitrary>], iteration_bounds = array<i64: 2, 1, 1>, scalar_prefetch = 0 : i64, scratch_operands = 0 : i64, tpu.core_type = #tpu.core_type<tc>, window_params = [{transform_indices = @transform_0, window_bounds = array<i64: 1, 4, 256>}, {transform_indices = @transform_1, window_bounds = array<i64: 1, 1, 256>}, {transform_indices = @transform_2, window_bounds = array<i64: 1, 1, 2, 256>}]} {
    %c0 = arith.constant 0 : index
    %c0_0 = arith.constant 0 : index
    %c0_1 = arith.constant 0 : index
    %0 = vector.load %arg3[%c0, %c0_0, %c0_1] : memref<1x4x256xf32, #tpu.memory_space<vmem>>, vector<1x4x256xf32>
    %1 = vector.shape_cast %0 : vector<1x4x256xf32> to vector<4x256xf32>
    %c0_2 = arith.constant 0 : index
    %c0_3 = arith.constant 0 : index
    %c0_4 = arith.constant 0 : index
    %2 = vector.load %arg4[%c0_2, %c0_3, %c0_4] : memref<1x1x256xi32, #tpu.memory_space<vmem>>, vector<1x1x256xi32>
    %3 = vector.shape_cast %2 : vector<1x1x256xi32> to vector<1x256xi32>
    %cst = arith.constant dense<0xFF800000> : vector<256xf32>
    %4 = vector.multi_reduction <maximumf>, %1, %cst [0] : vector<4x256xf32> to vector<256xf32>
    %5 = vector.shape_cast %4 : vector<256xf32> to vector<1x256xf32>
    %6 = vector.broadcast %5 : vector<1x256xf32> to vector<4x256xf32>
    %7 = arith.subf %1, %6 : vector<4x256xf32>
    %8 = math.exp %7 : vector<4x256xf32>
    %cst_5 = arith.constant dense<0.000000e+00> : vector<256xf32>
    %9 = vector.multi_reduction <add>, %8, %cst_5 [0] : vector<4x256xf32> to vector<256xf32>
    %10 = vector.shape_cast %9 : vector<256xf32> to vector<1x256xf32>
    %11 = math.log %10 : vector<1x256xf32>
    %12 = arith.addf %11, %5 : vector<1x256xf32>
    %13 = tpu.iota {dimensions = array<i32: 0>} : vector<4x256xi32>
    %c0_i32 = arith.constant 0 : i32
    %c3_i32 = arith.constant 3 : i32
    %14 = vector.broadcast %c0_i32 : i32 to vector<1x256xi32>
    %15 = arith.maxsi %14, %3 : vector<1x256xi32>
    %16 = vector.broadcast %c3_i32 : i32 to vector<1x256xi32>
    %17 = arith.minsi %16, %15 : vector<1x256xi32>
    %18 = vector.broadcast %17 : vector<1x256xi32> to vector<4x256xi32>
    %19 = arith.cmpi eq, %13, %18 : vector<4x256xi32>
    %cst_6 = arith.constant 0.000000e+00 : f32
    %20 = vector.broadcast %cst_6 : f32 to vector<4x256xf32>
    %21 = arith.select %19, %1, %20 : vector<4x256xi1>, vector<4x256xf32>
    %cst_7 = arith.constant dense<0.000000e+00> : vector<256xf32>
    %22 = vector.multi_reduction <add>, %21, %cst_7 [0] : vector<4x256xf32> to vector<256xf32>
    %23 = vector.shape_cast %22 : vector<256xf32> to vector<1x256xf32>
    %24 = arith.subf %12, %23 : vector<1x256xf32>
    %c-100_i32 = arith.constant -100 : i32
    %25 = vector.broadcast %c-100_i32 : i32 to vector<1x256xi32>
    %26 = arith.cmpi ne, %3, %25 : vector<1x256xi32>
    %cst_8 = arith.constant 0.000000e+00 : f32
    %27 = vector.broadcast %cst_8 : f32 to vector<1x256xf32>
    %28 = arith.select %26, %24, %27 : vector<1x256xi1>, vector<1x256xf32>
    %c0_i32_9 = arith.constant 0 : i32
    %29 = arith.cmpi eq, %arg2, %c0_i32_9 : i32
    %30 = arith.extui %29 : i1 to i32
    %c0_i32_10 = arith.constant 0 : i32
    %31 = arith.cmpi ne, %30, %c0_i32_10 : i32
    scf.if %31 {
      %cst_19 = arith.constant 0.000000e+00 : f32
      %41 = vector.broadcast %cst_19 : f32 to vector<2x256xf32>
      %c0_20 = arith.constant 0 : index
      %c0_21 = arith.constant 0 : index
      %c0_22 = arith.constant 0 : index
      %c0_23 = arith.constant 0 : index
      %42 = vector.load %arg5[%c0_20, %c0_21, %c0_22, %c0_23] : memref<1x1x2x256xf32, #tpu.memory_space<vmem>>, vector<1x1x2x256xf32>
      %43 = vector.shape_cast %42 : vector<1x1x2x256xf32> to vector<2x256xf32>
      %44 = vector.shape_cast %41 : vector<2x256xf32> to vector<1x1x2x256xf32>
      tpu.vector_store %arg5[%c0_20, %c0_21, %c0_22, %c0_23], %44 {strides = array<i32>} : memref<1x1x2x256xf32, #tpu.memory_space<vmem>>, vector<1x1x2x256xf32>,
    } else {
    }
    %c0_11 = arith.constant 0 : index
    %c0_12 = arith.constant 0 : index
    %c0_13 = arith.constant 0 : index
    %c0_14 = arith.constant 0 : index
    %32 = vector.load %arg5[%c0_11, %c0_12, %c0_13, %c0_14] : memref<1x1x2x256xf32, #tpu.memory_space<vmem>>, vector<1x1x2x256xf32>
    %33 = vector.shape_cast %32 : vector<1x1x2x256xf32> to vector<2x256xf32>
    %34 = arith.extui %26 : vector<1x256xi1> to vector<1x256xi32>
    %35 = arith.sitofp %34 : vector<1x256xi32> to vector<1x256xf32>
    %36 = tpu.concatenate %28, %35 in 0 : vector<1x256xf32>, vector<1x256xf32> -> vector<2x256xf32>
    %37 = arith.addf %33, %36 : vector<2x256xf32>
    %c0_15 = arith.constant 0 : index
    %c0_16 = arith.constant 0 : index
    %c0_17 = arith.constant 0 : index
    %c0_18 = arith.constant 0 : index
    %38 = vector.load %arg5[%c0_15, %c0_16, %c0_17, %c0_18] : memref<1x1x2x256xf32, #tpu.memory_space<vmem>>, vector<1x1x2x256xf32>
    %39 = vector.shape_cast %38 : vector<1x1x2x256xf32> to vector<2x256xf32>
    %40 = vector.shape_cast %37 : vector<2x256xf32> to vector<1x1x2x256xf32>
    tpu.vector_store %arg5[%c0_15, %c0_16, %c0_17, %c0_18], %40 {strides = array<i32>} : memref<1x1x2x256xf32, #tpu.memory_space<vmem>>, vector<1x1x2x256xf32>,
    return
  }
  func.func @transform_0(%arg0: i32, %arg1: i32, %arg2: i32) -> (i32, i32, i32) {
    %c1_i32 = arith.constant 1 : i32
    %0 = arith.muli %arg1, %c1_i32 : i32
    %1 = arith.addi %0, %arg2 : i32
    %c0_i32 = arith.constant 0 : i32
    %c0_i32_0 = arith.constant 0 : i32
    return %arg0, %c0_i32, %1 : i32, i32, i32
  }
  func.func @transform_1(%arg0: i32, %arg1: i32, %arg2: i32) -> (i32, i32, i32) {
    %c1_i32 = arith.constant 1 : i32
    %0 = arith.muli %arg1, %c1_i32 : i32
    %1 = arith.addi %0, %arg2 : i32
    %c0_i32 = arith.constant 0 : i32
    %c0_i32_0 = arith.constant 0 : i32
    return %arg0, %c0_i32, %1 : i32, i32, i32
  }
  func.func @transform_2(%arg0: i32, %arg1: i32, %arg2: i32) -> (i32, i32, i32, i32) {
    %c0_i32 = arith.constant 0 : i32
    %c0_i32_0 = arith.constant 0 : i32
    %c0_i32_1 = arith.constant 0 : i32
    return %arg0, %arg1, %c0_i32, %c0_i32_0 : i32, i32, i32, i32
  }
}

</mosaic_0001>

<bundles_post_ra>
// kernel: tpu_custom_call.1
= control target key start
LH: loop header
LB: loop body
LE: loop exit
PB: predicated region body
PF: predicated region fallthrough
CT: control target
= control target key end

     0   :  { %7 = vsyncpa [#allocation3], 0  ;;  %s1041_s0 = inlined_call_operand.hbm [shape: f32[2,4,256], index: 0, kind: input, shape index: {}]   ;;  %s1042_s1 = inlined_call_operand.hbm [shape: s32[2,1,256], index: 1, kind: input, shape index: {}]   ;;  %s1043_s2 = inlined_call_operand.hbm [shape: f32[2,1,2,256], index: 2, kind: output, shape index: {}]  }
   0x1   :  { %9 = vsyncpa [#allocation3 + $0x1], 0 }
   0x2   :  { %10 = vsyncpa [#allocation6], 0 }
   0x3   :  { %12 = vsyncpa [#allocation6 + $0x1], 0 }
   0x4   :  { %13 = vsyncpa [#allocation4], 0 }
   0x5   :  { %15 = vsyncpa [#allocation4 + $0x1], 0  ;;  %s788_s9 = smov 0   ;;  %s790_s10 = smov 0  }
   0x6   :  { %s792_s11 = smov 0   ;;  %s794_s12 = smov 0  }
   0x7   :  { %s796_s13 = smov 0   ;;  %s798_s14 = smov 0  }
   0x8 LB: > { %s519_s15 = sadd.s32 4294967295, %s765_s14   ;;  %s520_s16 = sadd.s32 4294967294, %s765_s14   ;;  %s765_s14 = sphi %s798_s14, %s21_s14   ;;  %s761_s13 = sphi %s796_s13, %s1063_s13   ;;  %s757_s12 = sphi %s794_s12, %s1062_s12   ;;  %s753_s11 = sphi %s792_s11, %s1061_s11   ;;  %s749_s10 = sphi %s790_s10, %s1060_s10   ;;  %s745_s9 = sphi %s788_s9, %s1059_s9  }
   0x9   : > { %s40_s17 = sadd.s32 1, %s761_s13  ;;  %s51_s18 = sadd.s32 1, %s753_s11 }
   0xa   : > { %p42_p0 = scmp.ge.s32.totalorder %s40_s17, 2  ;;  %p58_p1 = scmp.ne.s32.totalorder %s753_s11, %s749_s10 }
   0xb   : > { %p59_p2 = scmp.eq.s32.totalorder %s765_s14, 0  ;;  %p64_p3 = scmp.ne.s32.totalorder %s749_s10, %s745_s9 }
   0xc   : > { %s1065_s17 = smov (%p42_p0, %s40_s17), 0  ;;  %p65_p5 = scmp.eq.s32.totalorder %s519_s15, 0 }
   0xd   : > { %p829_p4 = por %p59_p2, %p58_p1  ;;  %s46_s20 = ssub.s32 %s761_s13, %s1065_s17 }
   0xe   : > { %p120_p6 = scmp.eq.s32.totalorder %s519_s15, 1  ;;  %p49_p7 = scmp.eq.s32.totalorder %s46_s20, 0 }
   0xf   : > { %p835_p8 = por %p65_p5, %p64_p3  ;;  %p126_p10 = scmp.eq.s32.totalorder %s520_s16, 1 }
  0x10   : > { %p839_p9 = por %p120_p6, %p58_p1  ;;  %p559_p13 = scmp.lt.s32.totalorder %s765_s14, 2 }
  0x11   : > { %s1047_s21 = scalar_select %p835_p8, 1, 0 }
  0x12   : > { %s1048_s22 = scalar_select %p839_p9, 1, 0 }
  0x13   : > { %s844_s23 = scalar_select %p49_p7, %s753_s11, %s51_s18  }
  0x14   : > { %p846_p11 = por %p126_p10, %p64_p3  ;;  %s853_s25 = sand.u32 1, %s753_s11  }
  0x15   : > { %s523_s26 = sshll.u32 %s853_s25, 3  ;;  %s539_s27 = sshll.u32 %s761_s13, 7 }
  0x16   : > { %s1049_s24 = scalar_select %p846_p11, 1, 0 }
  0x17   : > { %s860_s30 = scalar_lea.hbm %s1041_s0, %s539_s27  ;;  %s150_s3 = scalar_lea.vmem [#allocation2], %s523_s26 }
  0x18   : > { %s161_s4 = sshll.u32 %s150_s3, 4  ;;  %p866_p0 = pnand %p559_p13, %p829_p4  ;;  %s862_s4 = int_to_ptr.vmem [resolvable:$true] %s161_s4 }
  0x19   : > { %s147_s6 = scalar_lea.sflag [#allocation3], %s853_s25  ;;  %s619_s7 = scalar_lea.hbm %s860_s30, 128 }
  0x1a   : > { %p620_p3 = scmp.ne.s32.totalorder %s860_s30, %s619_s7  ;;  %p621_p5 = pneg %p866_p0 }
  0x1b   : > { %s624_s16 = scalar_lea.hbm %s1041_s0, 256  ;;  %p625_p4 = scmp.lt.u32.totalorder %s860_s30, %s1041_s0 }
  0x1c   : > { %p622_p6 = pnand %p621_p5, %p620_p3  ;;  %p626_p10 = scmp.lt.u32.totalorder %s624_s16, %s619_s7 }
  0x1d   : > { %p628_p12 = scmp.lt.u32.totalorder %s619_s7, %s860_s30 }
  0x1e   : > { %p623_p7 = pneg %p622_p6  ;;  %p627_p13 = por %p626_p10, %p625_p4 }
  0x20   : > { %p629_p1 = por %p628_p12, %p627_p13 }
  0x22   : > { %p630_p2 = pnand %p629_p1, %p623_p7 }
  0x24   : > { %633 = shalt.err (!%p630_p2)
}
  0x25   : > { %s634_s20 = scalar_lea.vmem %s862_s4, 128  ;;  %s767_s26 = smov [#allocation2]  }
  0x26   : > { %p635_p3 = scmp.ne.s32.totalorder %s862_s4, %s634_s20  ;;  %s639_s27 = sshll.u32 %s767_s26, 4  ;;  %s640_s27 = int_to_ptr.vmem [resolvable:$false] %s639_s27 }
  0x27   : > { %s641_s28 = scalar_lea.vmem %s640_s27, 256  ;;  %p642_p9 = scmp.lt.s32.totalorder %s862_s4, %s640_s27 }
  0x28   : > { %p637_p6 = pnand %p635_p3, %p621_p5  ;;  %p643_p4 = scmp.lt.s32.totalorder %s641_s28, %s634_s20 }
  0x2a   : > { %p638_p11 = pneg %p637_p6  ;;  %p644_p10 = por %p643_p4, %p642_p9 }
  0x2c   : > { %p645_p12 = pnand %p644_p10, %p638_p11 }
  0x2e   : > { %648 = shalt.err (!%p645_p12)
}
  0x2f   : > { %551 = dma.hbm_to_vmem [thread:$0]  (!%p866_p0), %s860_s30, 128, %s862_s4, %s147_s6  }
  0x30   : > { %p1051_p1 = scmp.lt.s32.totalorder %s765_s14, 3  ;;  %p1052_p2 = scmp.ge.s32.totalorder %s765_s14, 1 }
  0x31   : > { %s526_s3 = sshll.u32 %s853_s25, 1  ;;  %s540_s7 = sshll.u32 %s761_s13, 5 }
  0x32   : > { %p902_p7 = pnand %p1052_p2, %p1051_p1  ;;  %s911_s16 = scalar_lea.hbm %s1042_s1, %s540_s7 }
  0x33   : > { %s172_s18 = scalar_lea.vmem [#allocation5], %s526_s3  ;;  %s169_s30 = scalar_lea.sflag [#allocation6], %s853_s25 }
  0x34   : > { %s1053_s29 = scalar_select %p902_p7, 1, 0 }
  0x35   : > { %s183_s19 = sshll.u32 %s172_s18, 4  ;;  %s649_s4 = scalar_lea.hbm %s911_s16, 32  ;;  %s184_s19 = int_to_ptr.vmem [resolvable:$true] %s183_s19 }
  0x36   : > { %p650_p9 = scmp.ne.s32.totalorder %s911_s16, %s649_s4  ;;  %s654_s26 = scalar_lea.hbm %s1042_s1, 64 }
  0x37   : > { %p655_p3 = scmp.lt.u32.totalorder %s911_s16, %s1042_s1  ;;  %p656_p6 = scmp.lt.u32.totalorder %s654_s26, %s649_s4 }
  0x38   : > { %p652_p11 = pnand %p650_p9, %p621_p5  ;;  %p658_p10 = scmp.lt.u32.totalorder %s649_s4, %s911_s16 }
  0x39   : > { %p657_p4 = por %p656_p6, %p655_p3 }
  0x3a   : > { %p653_p13 = pneg %p652_p11 }
  0x3b   : > { %p659_p12 = por %p658_p10, %p657_p4 }
  0x3d   : > { %p660_p1 = pnand %p659_p12, %p653_p13 }
  0x3f   : > { %663 = shalt.err (!%p660_p1)
}
  0x40   : > { %s664_s25 = scalar_lea.vmem %s184_s19, 32  ;;  %s768_s3 = smov [#allocation5]  }
  0x41   : > { %p665_p2 = scmp.ne.s32.totalorder %s184_s19, %s664_s25  ;;  %s669_s7 = sshll.u32 %s768_s3, 4  ;;  %s670_s7 = int_to_ptr.vmem [resolvable:$false] %s669_s7 }
  0x42   : > { %s671_s8 = scalar_lea.vmem %s670_s7, 64  ;;  %p672_p8 = scmp.lt.s32.totalorder %s184_s19, %s670_s7 }
  0x43   : > { %p667_p9 = pnand %p665_p2, %p621_p5  ;;  %p673_p7 = scmp.lt.s32.totalorder %s671_s8, %s664_s25 }
  0x45   : > { %p668_p11 = pneg %p667_p9  ;;  %p674_p3 = por %p673_p7, %p672_p8 }
  0x47   : > { %p675_p6 = pnand %p674_p3, %p668_p11 }
  0x49   : > { %678 = shalt.err (!%p675_p6)
}
  0x4a   : > { %554 = dma.hbm_to_vmem [thread:$0]  (!%p866_p0), %s911_s16, 32, %s184_s19, %s169_s30  }
  0x4b   : > { %p1054_p13 = scmp.ne.s32.totalorder %s1053_s29, 0 }
  0x4c   : > { %s936_s15 = sand.u32 (!%p1054_p13), 1, %s749_s10   ;;  %p1055_p5 = scmp.ne.s32.totalorder (!%p1054_p13), %s1047_s21, 0 }
  0x4d   : > { %192 = sbr.rel (%p1054_p13) target bundleno = 183 (0xb7), region = 28  ;;  %s530_s18 = sshll.u32 (!%p1054_p13), %s936_s15, 3 }
  0x4e   : > { %s195_s4 = scalar_lea.sflag (!%p1054_p13), [#allocation3], %s936_s15  ;;  %s198_s6 = scalar_lea.vmem (!%p1054_p13), [#allocation2], %s530_s18 }
  0x54   : > { %732 = dma.done.wait (%p1055_p5), %s195_s4, 128  }
  0x55   : > { %734 = vsyncadd (%p1055_p5), %s195_s4, 4294967168  ;;  %s531_s5 = sshll.u32 %s936_s15, 1  ;;  %s204_s29 = scalar_lea.sflag [#allocation6], %s936_s15 }
  0x56   : > { %s207_s16 = scalar_lea.vmem [#allocation5], %s531_s5 }
  0x57   : > { %736 = dma.done.wait (%p1055_p5), %s204_s29, 32  }
  0x58   : > { %738 = vsyncadd (%p1055_p5), %s204_s29, 4294967264  ;;  %s532_s19 = sshll.u32 %s936_s15, 2  ;;  %v769_v0 = vmov 0.0   ;;  %vm242_vm0 = vcmask 1043456   ;;  %v237_v1 = vld [vmem:[%s198_s6] sm:$0xff]  ;;  %v287_v17 = vlaneseq  ;;  %vm371_vm6 = vcmask 1040384  }
  0x59   : > { %s951_s30 = scalar_lea.vmem [#allocation7], %s532_s19  ;;  %v240_v2 = vcombine.high %v237_v1, %v237_v1  ;;  %v243_v3 = vsel %vm242_vm0, %v237_v1, -inf  ;;  %v957_v12 = vld [vmem:[%s207_s16] sm:$0x3]  ;;  %v770_v59 = vmov 1966171168  }
  0x5a   : > { %345 = vst [vmem:[%s951_s30] sm:$0xf] %v769_v0  ;;  %v244_v4 = vrot.slane %v243_v3, 4  ;;  %vm289_vm1 = vcmp.gt.s32.totalorder %v957_v12, 0  ;;  %v961_v21 = vshrl.u32 %v287_v17, 7  ;;  %v326_v60 = vunpack.c.l.s4 %v770_v59  ;;  %s541_s21 = sshll.u32 %s757_s12, 6  ;;  %s404_s20 = sshll.u32 %s951_s30, 4  ;;  %s993_s20 = int_to_ptr.vmem [resolvable:$true] %s404_s20 }
  0x5b   : > { %v250_v5 = vsel %vm242_vm0, %v240_v2, -inf  ;;  %v290_v19 = vsel %vm289_vm1, %v957_v12, 0  ;;  %vm321_vm5 = vcmp.ne.s32.totalorder %v957_v12, 4294967196  ;;  %s991_s28 = scalar_lea.hbm %s1043_s2, %s541_s21  ;;  %s388_s25 = scalar_lea.sflag [#allocation4], %s936_s15 }
  0x5c   : > { %v245_v6 = vmax.f32 %v243_v3, %v244_v4  ;;  %v251_v7 = vrot.slane %v250_v5, 4  ;;  %vm291_vm2 = vcmp.lt.s32.totalorder %v290_v19, 3  ;;  %v964_v24 = vsub.s32 0, %v961_v21  ;;  %s679_s3 = scalar_lea.vmem %s993_s20, 64  ;;  %p1056_p0 = scmp.ne.s32.totalorder %s1048_s22, 0 }
  0x5d   : > { %v292_v25 = vsel %vm291_vm2, %v290_v19, 3  ;;  %v967_v26 = vsub.s32 1, %v961_v21  ;;  %p680_p8 = scmp.ne.s32.totalorder %s993_s20, %s679_s3  ;;  %s772_s12 = smov [#allocation7]  }
  0x5e   : > { %v246_v8 = vrot.slane %v245_v6, 2  ;;  %v252_v9 = vmax.f32 %v250_v5, %v251_v7  ;;  %v296_v27 = vrot.slane %v292_v25, %v964_v24  ;;  %v327_v5 = vunpack.c.0.s8 %v326_v60  ;;  %s683_s7 = sshll.u32 %s772_s12, 4  ;;  %s684_s7 = int_to_ptr.vmem [resolvable:$false] %s683_s7 }
  0x5f   : > { %v300_v28 = vrot.slane %v292_v25, %v967_v26  ;;  %p681_p7 = pnand %p680_p8, %p1056_p0  ;;  %s685_s8 = scalar_lea.vmem %s684_s7, 128 }
  0x60   : > { %v247_v10 = vmax.f32 %v245_v6, %v246_v8  ;;  %v253_v11 = vrot.slane %v252_v9, 2  ;;  %vm301_vm3 = vcmp.eq.s32.totalorder %v961_v21, %v296_v27  ;;  %p686_p10 = scmp.lt.s32.totalorder %s993_s20, %s684_s7  ;;  %p687_p12 = scmp.lt.s32.totalorder %s685_s8, %s679_s3 }
  0x61   : > { %vm302_vm4 = vcmp.eq.s32.totalorder %v961_v21, %v300_v28  ;;  %v303_v29 = vsel %vm301_vm3, %v237_v1, 0.0  ;;  %v346_v28 = vld [vmem:[%s951_s30] sm:$0xf]  ;;  %p682_p4 = pneg %p681_p7 }
  0x62   : > { %v248_v13 = vrot.slane %v247_v10, 1  ;;  %v254_v14 = vmax.f32 %v252_v9, %v253_v11  ;;  %v304_v33 = vsel %vm302_vm4, %v240_v2, 0.0  ;;  %v305_v35 = vsel %vm242_vm0, %v303_v29, 0.0  ;;  %p688_p1 = por %p687_p12, %p686_p10 }
  0x63   : > { %v312_v39 = vsel %vm242_vm0, %v304_v33, 0.0  ;;  %v306_v40 = vrot.slane %v305_v35, 4  ;;  %v330_v9 = vsub.s32 %v327_v5, %v961_v21  ;;  %v771_v11 = vmov 1983009808  }
  0x64   : > { %v249_v15 = vmax.f32 %v247_v10, %v248_v13  ;;  %v255_v16 = vrot.slane %v254_v14, 1  ;;  %v313_v43 = vrot.slane %v312_v39, 4  ;;  %v378_v13 = vunpack.c.l.s4 %v771_v11  ;;  %p689_p2 = pnand %p688_p1, %p682_p4 }
  0x65   : > { %v307_v46 = vadd.f32 %v306_v40, %v305_v35 }
  0x66   : > { %v256_v18 = vmax.f32 %v254_v14, %v255_v16  ;;  %v314_v49 = vadd.f32 %v313_v43, %v312_v39  ;;  %v533_v16 = vsel %vm321_vm5, 1.0, %v769_v0 }
  0x67   : > { %v308_v52 = vrot.slane %v307_v46, 2  ;;  %v364_v19 = vrot.slane %v533_v16, %v964_v24 }
  0x68   : > { %v259_v20 = vcombine.low %v249_v15, %v256_v18  ;;  %v315_v54 = vrot.slane %v314_v49, 2 }
  0x69   : > { %v309_v55 = vadd.f32 %v308_v52, %v307_v46 }
  0x6a   : > { %v261_v22 = vsub.f32 %v237_v1, %v259_v20  ;;  %v316_v56 = vadd.f32 %v315_v54, %v314_v49 }
  0x6b   : > { %v310_v57 = vrot.slane %v309_v55, 1 }
  0x6c   : > { %v262_v23 = vmul.f32 1.442695, %v261_v22  ;;  %v317_v58 = vrot.slane %v316_v56, 1 }
  0x6d   : > { %v311_v63 = vadd.f32 %v310_v57, %v309_v55 }
  0x6e   : > { %613 = vpow2.f32 %v262_v23  ;;  %v318_v4 = vadd.f32 %v317_v58, %v316_v56 }
  0x78   : > { %v614_v30 = vpop.eup %613 }
  0x79   : > { %v265_v31 = vcombine.high %v614_v30, %v614_v30  ;;  %v267_v32 = vsel %vm242_vm0, %v614_v30, 0.0 }
  0x7a   : > { %v268_v34 = vrot.slane %v267_v32, 4 }
  0x7b   : > { %v274_v36 = vsel %vm242_vm0, %v265_v31, 0.0 }
  0x7c   : > { %v269_v37 = vadd.f32 %v268_v34, %v267_v32  ;;  %v275_v38 = vrot.slane %v274_v36, 4 }
  0x7e   : > { %v270_v41 = vrot.slane %v269_v37, 2  ;;  %v276_v42 = vadd.f32 %v275_v38, %v274_v36 }
  0x80   : > { %v271_v44 = vadd.f32 %v270_v41, %v269_v37  ;;  %v277_v45 = vrot.slane %v276_v42, 2 }
  0x82   : > { %v272_v47 = vrot.slane %v271_v44, 1  ;;  %v278_v48 = vadd.f32 %v277_v45, %v276_v42 }
  0x84   : > { %v273_v50 = vadd.f32 %v272_v47, %v271_v44  ;;  %v279_v51 = vrot.slane %v278_v48, 1 }
  0x86   : > { %v280_v53 = vadd.f32 %v279_v51, %v278_v48  ;;  %615 = vlog2.f32 %v273_v50 }
  0x88   : > { %617 = vlog2.f32 %v280_v53 }
  0x90   : > { %v616_v61 = vpop.eup %615 }
  0x91   : > { %v282_v62 = vmul.f32 0.6931472, %v616_v61 }
  0x92   : > { %v618_v1 = vpop.eup %617 }
  0x93   : > { %v284_v2 = vmul.f32 0.6931472, %v618_v1  ;;  %v285_v3 = vadd.f32 %v282_v62, %v249_v15  ;;  %v379_v15 = vunpack.c.0.s8 %v378_v13 }
  0x95   : > { %v286_v6 = vadd.f32 %v284_v2, %v256_v18  ;;  %v319_v7 = vsub.f32 %v285_v3, %v311_v63  ;;  %v368_v18 = vrot.slane %v533_v16, %v967_v26  ;;  %v382_v23 = vsub.s32 %v379_v15, %v961_v21 }
  0x97   : > { %v320_v8 = vsub.f32 %v286_v6, %v318_v4 }
  0x99   : > { %v324_v10 = vcombine.low %v319_v7, %v320_v8 }
  0x9b   : > { %v331_v14 = vrot.slane %v324_v10, %v330_v9 }
  0x9d   : > { %v338_v17 = vrot.slane %v331_v14, %v330_v9 }
  0x9f   : > { %v340_v20 = vsel %vm321_vm5, %v338_v17, 0.0 }
  0xa0   : > { %v353_v12 = vrot.slane %v340_v20, %v964_v24  ;;  %v357_v22 = vrot.slane %v340_v20, %v967_v26 }
  0xa2   : > { %v372_v25 = vsel %vm371_vm6, %v353_v12, %v364_v19  ;;  %v373_v27 = vsel %vm371_vm6, %v357_v22, %v368_v18 }
  0xa3   : > { %v376_v0 = vcombine.low %v372_v25, %v373_v27 }
  0xa5   : > { %v383_v29 = vrot.slane %v376_v0, %v382_v23 }
  0xa7   : > { %v385_v30 = vadd.f32 %v383_v29, %v346_v28 }
  0xa9   : > { %386 = vst [vmem:[%s951_s30] sm:$0xf] %v385_v30 }
  0xaa   : > { %692 = shalt.err (!%p689_p2)
}
  0xab   : > { %s693_s15 = scalar_lea.hbm %s991_s28, 64  ;;  %s697_s6 = scalar_lea.hbm %s1043_s2, 128 }
  0xac   : > { %p694_p9 = scmp.ne.s32.totalorder %s991_s28, %s693_s15  ;;  %p698_p6 = scmp.lt.u32.totalorder %s991_s28, %s1043_s2 }
  0xad   : > { %p699_p13 = scmp.lt.u32.totalorder %s697_s6, %s693_s15  ;;  %p701_p8 = scmp.lt.u32.totalorder %s693_s15, %s991_s28 }
  0xae   : > { %p695_p11 = pnand %p694_p9, %p1056_p0 }
  0xaf   : > { %p700_p5 = por %p699_p13, %p698_p6 }
  0xb0   : > { %p696_p3 = pneg %p695_p11 }
  0xb1   : > { %p702_p7 = por %p701_p8, %p700_p5 }
  0xb3   : > { %p703_p4 = pnand %p702_p7, %p696_p3 }
  0xb5   : > { %706 = shalt.err (!%p703_p4)
}
  0xb6   : > { %546 = dma.vmem_to_hbm [thread:$0]  (%p1056_p0), %s993_s20, 64, %s991_s28, %s388_s25  }
  0xb7 PF: > { %s416_s16 = sand.u32 1, %s745_s9   ;;  %p1057_p10 = scmp.ne.s32.totalorder %s1049_s24, 0 }
  0xb8   : > { %p1058_p12 = scmp.ge.s32.totalorder %s765_s14, 2  ;;  %s417_s19 = scalar_lea.sflag [#allocation4], %s416_s16 }
  0xba   : > { %p556_p1 = pnand %p1058_p12, %p1057_p10 }
  0xbc   : > { %740 = dma.done.wait (!%p556_p1), %s417_s19, 64  }
  0xbd   : > { %742 = vsyncadd (!%p556_p1), %s417_s19, 4294967232  ;;  %s21_s14 = sadd.s32 1, %s765_s14   ;;  %s1059_s9 = smov %s749_s10 }
  0xbe   : > { %p18_p2 = scmp.ge.s32.totalorder %s21_s14, 4   ;;  %s1060_s10 = smov %s753_s11 }
  0xbf   : > { %s1061_s11 = smov %s844_s23  ;;  %s1062_s12 = smov %s761_s13 }
  0xc0   : > { %s1063_s13 = smov %s1065_s17  ;;  %20 = sbr.rel (!%p18_p2) target bundleno = 8 (0x8), region = 90 }
  0xc7   :  { %422 = vsyncpa [#allocation3], 1 }
  0xc8   :  { %424 = vsyncpa [#allocation3 + $0x1], 1 }
  0xc9   :  { %425 = vsyncpa [#allocation6], 1 }
  0xca   :  { %427 = vsyncpa [#allocation6 + $0x1], 1 }
  0xcb   :  { %428 = vsyncpa [#allocation4], 1 }
  0xcc   :  { %430 = vsyncpa [#allocation4 + $0x1], 1 }

</bundles_post_ra>
